<compile_context>
chip_gen: v5e
topology: v5e:2x2
jax: 0.10.0
libtpu: 0.0.40
codegen_flags: <defaults>
</compile_context>

<pallas_src>
import jax
import jax.numpy as jnp
from jax.experimental import pallas as pl
from jax.experimental.pallas import tpu as pltpu


def _fused_heads_kernel(x_ref, w_ref, b_ref, o_ref):
    # x_ref: (Bt, D)    batch tile of X
    # w_ref: (D, N)     fused weights for ALL labels, N = L * C (lane-dense)
    # b_ref: (1, N)     fused bias
    # o_ref: (Bt, N)    lane-dense output tile
    acc = jnp.dot(x_ref[...], w_ref[...],
                  preferred_element_type=jnp.float32)      # (Bt, N) on MXU
    o_ref[...] = (acc + b_ref[...]).astype(o_ref.dtype)


def kblstm_classifier_forward(x, w_stack, b_stack, *, block_b=None):
    """Pallas equivalent of KBLSTMClassifier.forward (supsup=False).

    x:        (B, D) float32
    w_stack:  (L, C, D) float32  -- one nn.Linear weight per label
    b_stack:  (L, C)    float32  -- one nn.Linear bias per label
    Returns a list of L arrays of shape (B, C).
    """
    B, D = x.shape
    L, C, _ = w_stack.shape
    N = L * C

    # Fuse all heads once, outside the kernel:
    #   W_all[d, l*C + c] = W[l, c, d]   ->  X @ W_all == concat_l(X @ W[l].T)
    w_all = jnp.transpose(w_stack, (2, 0, 1)).reshape(D, N)
    b_all = b_stack.reshape(1, N)

    # Batch tiling: full batch at small sizes; multiple-of-8 tiles when large.
    if block_b is None:
        if B > 512 and B % 512 == 0:
            block_b = 512
        else:
            block_b = B
    # TODO(synk): for very large B*D (esp. v7x 64 MiB VMEM) pick block_b from
    # vmem budget and set vmem_limit_bytes; not needed at these shapes.
    assert B % block_b == 0, "block_b must divide B"
    grid = (B // block_b,)

    out = pl.pallas_call(
        _fused_heads_kernel,
        out_shape=jax.ShapeDtypeStruct((B, N), x.dtype),
        grid_spec=pltpu.PrefetchScalarGridSpec(
            num_scalar_prefetch=0,
            grid=grid,
            in_specs=[
                pl.BlockSpec((block_b, D), lambda i: (i, 0)),  # batch tile of X
                pl.BlockSpec((D, N), lambda i: (0, 0)),        # fused weights (reused)
                pl.BlockSpec((1, N), lambda i: (0, 0)),        # fused bias (reused)
            ],
            out_specs=pl.BlockSpec((block_b, N), lambda i: (i, 0)),
        ),
        compiler_params=pltpu.CompilerParams(
            # Batch tiles write disjoint output blocks -> safe to shard across
            # v7x's 2 TensorCores; harmless on v5e/v6e.
            dimension_semantics=("parallel",),
        ),
    )(x, w_all, b_all)

    # Per-label split is pure layout plumbing done once in the wrapper.
    return jnp.split(out, L, axis=1)


def init_params(key, input_dim, num_classes, num_labels):
    """Deterministic init matching nn.Linear shapes (weight: (C, D), bias: (C,))."""
    kw, kb = jax.random.split(key)
    bound = 1.0 / jnp.sqrt(input_dim)
    w_stack = jax.random.uniform(
        kw, (num_labels, num_classes, input_dim),
        minval=-bound, maxval=bound, dtype=jnp.float32)
    b_stack = jax.random.uniform(
        kb, (num_labels, num_classes),
        minval=-bound, maxval=bound, dtype=jnp.float32)
    return w_stack, b_stack


if __name__ == "__main__":
    # Small shapes consistent with the module: batch=8, input_dim=32,
    # num_classes=4, num_labels=4  (supsup=False path; MultitaskMaskLinear unused).
    batch = 8
    input_dim = 32
    num_classes = 4
    num_labels = 4

    key = jax.random.PRNGKey(0)
    kx, kp = jax.random.split(key)
    x = jax.random.normal(kx, (batch, input_dim), dtype=jnp.float32)
    w_stack, b_stack = init_params(kp, input_dim, num_classes, num_labels)

    outs = kblstm_classifier_forward(x, w_stack, b_stack)
    outs = [jax.block_until_ready(o) for o in outs]

    # Pure-JAX reference check of the forward semantics.
    refs = [x @ w_stack[l].T + b_stack[l] for l in range(num_labels)]
    for o, r in zip(outs, refs):
        assert o.shape == (batch, num_classes)
        assert jnp.allclose(o, r, atol=1e-5, rtol=1e-5)

    print("KERNEL_OK")
</pallas_src>

<mosaic_0001>
module attributes {stable_mosaic.version = 11 : i64} {
  func.func @_fused_heads_kernel(%arg0: i32, %arg1: memref<8x32xf32, #tpu.memory_space<vmem>>, %arg2: memref<32x16xf32, #tpu.memory_space<vmem>>, %arg3: memref<1x16xf32, #tpu.memory_space<vmem>>, %arg4: memref<8x16xf32, #tpu.memory_space<vmem>>) attributes {dimension_semantics = [#tpu.dimension_semantics<parallel>], iteration_bounds = array<i64: 1>, scalar_prefetch = 0 : i64, scratch_operands = 0 : i64, tpu.core_type = #tpu.core_type<tc>, window_params = [{transform_indices = @transform_0, window_bounds = array<i64: 8, 32>}, {pipeline_mode = #tpu.pipeline_mode<synchronous>, transform_indices = @transform_1, window_bounds = array<i64: 32, 16>}, {pipeline_mode = #tpu.pipeline_mode<synchronous>, transform_indices = @transform_2, window_bounds = array<i64: 1, 16>}, {transform_indices = @transform_3, window_bounds = array<i64: 8, 16>}]} {
    %c0 = arith.constant 0 : index
    %c0_0 = arith.constant 0 : index
    %0 = vector.load %arg1[%c0, %c0_0] : memref<8x32xf32, #tpu.memory_space<vmem>>, vector<8x32xf32>
    %c0_1 = arith.constant 0 : index
    %c0_2 = arith.constant 0 : index
    %1 = vector.load %arg2[%c0_1, %c0_2] : memref<32x16xf32, #tpu.memory_space<vmem>>, vector<32x16xf32>
    %cst = arith.constant dense<0.000000e+00> : vector<8x16xf32>
    %2 = tpu.matmul %0, %1, %cst {dimension_numbers = #tpu.dot_dimension_numbers<[1], [0], [0], [1], [0, 0, 1, 1], [], []>} : vector<8x32xf32>, vector<32x16xf32>, vector<8x16xf32> -> vector<8x16xf32>
    %c0_3 = arith.constant 0 : index
    %c0_4 = arith.constant 0 : index
    %3 = vector.load %arg3[%c0_3, %c0_4] : memref<1x16xf32, #tpu.memory_space<vmem>>, vector<1x16xf32>
    %4 = vector.broadcast %3 : vector<1x16xf32> to vector<8x16xf32>
    %5 = arith.addf %2, %4 : vector<8x16xf32>
    %c0_5 = arith.constant 0 : index
    %c0_6 = arith.constant 0 : index
    %6 = vector.load %arg4[%c0_5, %c0_6] : memref<8x16xf32, #tpu.memory_space<vmem>>, vector<8x16xf32>
    tpu.vector_store %arg4[%c0_5, %c0_6], %5 {strides = array<i32>} : memref<8x16xf32, #tpu.memory_space<vmem>>, vector<8x16xf32>,
    return
  }
  func.func @transform_0(%arg0: i32) -> (i32, i32) {
    %c0_i32 = arith.constant 0 : i32
    %c0_i32_0 = arith.constant 0 : i32
    return %arg0, %c0_i32 : i32, i32
  }
  func.func @transform_1(%arg0: i32) -> (i32, i32) {
    %c0_i32 = arith.constant 0 : i32
    %c0_i32_0 = arith.constant 0 : i32
    %c0_i32_1 = arith.constant 0 : i32
    return %c0_i32, %c0_i32_0 : i32, i32
  }
  func.func @transform_2(%arg0: i32) -> (i32, i32) {
    %c0_i32 = arith.constant 0 : i32
    %c0_i32_0 = arith.constant 0 : i32
    %c0_i32_1 = arith.constant 0 : i32
    return %c0_i32, %c0_i32_0 : i32, i32
  }
  func.func @transform_3(%arg0: i32) -> (i32, i32) {
    %c0_i32 = arith.constant 0 : i32
    %c0_i32_0 = arith.constant 0 : i32
    return %arg0, %c0_i32 : i32, i32
  }
}

</mosaic_0001>

<bundles_post_ra>
// kernel: tpu_custom_call.1
= control target key start
LH: loop header
LB: loop body
LE: loop exit
PB: predicated region body
PF: predicated region fallthrough
CT: control target
= control target key end

     0   :  { %s137_s0 = inlined_call_operand.vmem [shape: f32[8,32], index: 0, kind: input, shape index: {}]   ;;  %s138_s1 = inlined_call_operand.vmem [shape: f32[32,16], index: 1, kind: input, shape index: {}]   ;;  %s139_s2 = inlined_call_operand.vmem [shape: f32[1,16], index: 2, kind: input, shape index: {}]   ;;  %s140_s3 = inlined_call_operand.hbm [shape: f32[8,16], index: 3, kind: output, shape index: {}]  }
   0x1   :  { %v19_v0 = vld [vmem:[%s138_s1 + $0x18] sm:$0xff]  ;;  %v18_v1 = vld [vmem:[%s138_s1 + $0x10] sm:$0xff]  ;;  %v17_v2 = vld [vmem:[%s138_s1 + $0x8] sm:$0xff] }
   0x2   :  { %40 = vmatpush.msra.mxu0 %v19_v0 }
   0x3   :  { %8 = vsyncpa [#allocation3], 0  ;;  %v16_v3 = vld [vmem:[%s138_s1] sm:$0xff]  ;;  %vm24_vm0 = vcmask 261120   ;;  %s95_s24 = smov [#allocation2]   ;;  %s57_s28 = sshll.u32 %s140_s3, 4  ;;  %s58_s28 = int_to_ptr.hbm [resolvable:$true] %s57_s28 }
   0x4   :  { %41 = vmatpush.msra.mxu0 %v18_v1  ;;  %v15_v4 = vld [vmem:[%s137_s0] sm:$0xff]  ;;  %s55_s25 = sshll.u32 %s95_s24, 4  ;;  %vm48_vm1 = vcmask 130048   ;;  %s56_s25 = int_to_ptr.vmem [resolvable:$true] %s55_s25 }
   0x5   :  { %v68_v5 = vld [vmem:[%s139_s2] ss:$0 sm:$0xff] }
   0x6   :  { %42 = vmatpush.msra.mxu0 %v17_v2 }
   0x8   :  { %43 = vmatpush.msra.mxu0 %v16_v3 }
   0x9   :  { %66 = vmatmul.msk.f32.vlgmr.msra.gmra.mxu0 %vm24_vm0, %v15_v4 }
  0x86   :  { %v45_v6 = vpop.f32.mrf.mxu0 }
  0x87   :  { %v46_v7 = vadd.f32 %v68_v5, %v45_v6 }
  0x89   :  { %49 = vst.msk [vmem:[#allocation2] sm:$0xff] %vm48_vm1, %v46_v7 }
  0x8a   :  { %60 = dma.vmem_to_hbm [thread:$0]  %s56_s25, 128, %s58_s28, [#allocation3]  }
  0x8b   :  { %93 = dma.done.wait [#allocation3], 128  }
  0x8c   :  { %94 = vsyncadd [#allocation3], 4294967168 }
  0x8d   :  { %65 = vsyncpa [#allocation3], 1 }

</bundles_post_ra>
